<compile_context>
chip_gen: v5e
topology: v5e:2x2
jax: 0.10.0
libtpu: 0.0.40
codegen_flags: <defaults>
</compile_context>

<pallas_src>
import jax
import jax.numpy as jnp
from jax.experimental import pallas as pl
from jax.experimental.pallas import tpu as pltpu

NUM_COEFFS = 6   # numerator a0..a5  (degree 5)
DEN_COEFFS = 4   # denominator b1..b4 (degree 4)
_LANES = 128


def _rational_kernel(num_ref, den_ref, x_ref, o_ref):
    # num_ref: SMEM (6,) f32, den_ref: SMEM (4,) f32
    # x_ref/o_ref: VMEM (block_rows, 128) tiles in the array's native dtype
    x = x_ref[...].astype(jnp.float32)

    a0 = num_ref[0]; a1 = num_ref[1]; a2 = num_ref[2]
    a3 = num_ref[3]; a4 = num_ref[4]; a5 = num_ref[5]
    # |b_k * x^k| = |b_k| * |x|^k  -> abs of 4 scalars on the scalar slot.
    b1 = jnp.abs(den_ref[0]); b2 = jnp.abs(den_ref[1])
    b3 = jnp.abs(den_ref[2]); b4 = jnp.abs(den_ref[3])

    # Numerator P(x): Horner's rule.
    num = a5 * x + a4
    num = num * x + a3
    num = num * x + a2
    num = num * x + a1
    num = num * x + a0

    # Denominator Q(x) = 1 + sum_k |b_k| * |x|^k : Horner in |x|.
    ax = jnp.abs(x)
    den = b4 * ax + b3
    den = den * ax + b2
    den = den * ax + b1
    den = den * ax + 1.0

    # EUP approximate reciprocal + one Newton-Raphson refinement.
    r = pl.reciprocal(den, approx=True)
    r = r * (2.0 - den * r)

    o_ref[...] = (num * r).astype(o_ref.dtype)


def recurrent_rational_forward(x, num_w, den_w, *, max_block_rows=2048):
    """Elementwise rational activation via a Pallas TPU kernel.

    x: any shape (NCHW in the reference); num_w: (6,) f32; den_w: (4,) f32.
    """
    orig_shape = x.shape

    flat = x.reshape(-1)
    n = flat.shape[0]
    n_pad = pl.cdiv(n, _LANES) * _LANES
    padded = n_pad != n
    if padded:
        # <= 127 padded elements; Q(x) >= 1 so padded lanes stay finite.
        flat = jnp.pad(flat, (0, n_pad - n))
    x2d = flat.reshape(-1, _LANES)
    rows = x2d.shape[0]

    if rows <= max_block_rows:
        block_rows = rows              # full-extent block (no (8,128) issue)
    else:
        block_rows = max_block_rows    # multiple of 32 -> valid for any dtype
    grid = (pl.cdiv(rows, block_rows),)

    out2d = pl.pallas_call(
        _rational_kernel,
        out_shape=jax.ShapeDtypeStruct(x2d.shape, x.dtype),
        grid_spec=pltpu.PrefetchScalarGridSpec(
            num_scalar_prefetch=0,
            grid=grid,
            in_specs=[
                pl.BlockSpec(memory_space=pltpu.MemorySpace.SMEM),  # numerator coeffs
                pl.BlockSpec(memory_space=pltpu.MemorySpace.SMEM),  # denominator coeffs
                pl.BlockSpec((block_rows, _LANES), lambda i: (i, 0)),
            ],
            out_specs=pl.BlockSpec((block_rows, _LANES), lambda i: (i, 0)),
        ),
        compiler_params=pltpu.CompilerParams(
            dimension_semantics=("parallel",)),   # megacore sharding on v7x
    )(num_w, den_w, x2d)

    out = out2d.reshape(-1)
    if padded:
        out = out[:n]
    return out.reshape(orig_shape)


def _reference(x, num_w, den_w):
    """Pure-JAX reference matching rational 'version A' semantics."""
    xf = x.astype(jnp.float32)
    powers = jnp.stack([xf ** i for i in range(NUM_COEFFS)], axis=-1)  # x^0..x^5
    numerator = jnp.sum(powers * num_w, axis=-1)
    den_terms = jnp.abs(powers[..., 1:DEN_COEFFS + 1] * den_w)
    denominator = 1.0 + jnp.sum(den_terms, axis=-1)
    return (numerator / denominator).astype(x.dtype)


# TODO(synk): input_retrieve_mode / distribution histogram (physt) hooks are
# host-side instrumentation with no Pallas equivalent; forward semantics only.

if __name__ == "__main__":
    # Deterministic synthetic weights (approximate LeakyReLU-like init for
    # degrees (5, 4)); shapes match Rational.__init__ parameter shapes.
    num_w = jnp.array([0.0298, 0.6183, 2.3233, 3.0519, 1.4854, 0.2510],
                      dtype=jnp.float32)
    den_w = jnp.array([2.3830, 0.0000, 0.8149, 0.0000], dtype=jnp.float32)

    key = jax.random.PRNGKey(0)
    x = jax.random.normal(key, (2, 4, 16, 16), dtype=jnp.float32)  # NCHW

    out = recurrent_rational_forward(x, num_w, den_w)
    out = jax.block_until_ready(out)

    ref = _reference(x, num_w, den_w)
    assert out.shape == x.shape and out.dtype == x.dtype
    assert jnp.max(jnp.abs(out - ref)) < 1e-4, "mismatch vs reference"

    print("KERNEL_OK")
</pallas_src>

<mosaic_0001>
module attributes {stable_mosaic.version = 11 : i64} {
  func.func @_rational_kernel(%arg0: i32, %arg1: memref<6xf32, #tpu.memory_space<smem>>, %arg2: memref<4xf32, #tpu.memory_space<smem>>, %arg3: memref<16x128xf32, #tpu.memory_space<vmem>>, %arg4: memref<16x128xf32, #tpu.memory_space<vmem>>) attributes {dimension_semantics = [#tpu.dimension_semantics<parallel>], iteration_bounds = array<i64: 1>, scalar_prefetch = 0 : i64, scratch_operands = 0 : i64, tpu.core_type = #tpu.core_type<tc>, window_params = [{transform_indices = @transform_0, window_bounds = array<i64: 6>}, {transform_indices = @transform_1, window_bounds = array<i64: 4>}, {transform_indices = @transform_2, window_bounds = array<i64: 16, 128>}, {transform_indices = @transform_3, window_bounds = array<i64: 16, 128>}]} {
    %c0 = arith.constant 0 : index
    %c0_0 = arith.constant 0 : index
    %0 = vector.load %arg3[%c0, %c0_0] : memref<16x128xf32, #tpu.memory_space<vmem>>, vector<16x128xf32>
    %c0_1 = arith.constant 0 : index
    %1 = memref.load %arg1[%c0_1] : memref<6xf32, #tpu.memory_space<smem>>
    %c1 = arith.constant 1 : index
    %2 = memref.load %arg1[%c1] : memref<6xf32, #tpu.memory_space<smem>>
    %c2 = arith.constant 2 : index
    %3 = memref.load %arg1[%c2] : memref<6xf32, #tpu.memory_space<smem>>
    %c3 = arith.constant 3 : index
    %4 = memref.load %arg1[%c3] : memref<6xf32, #tpu.memory_space<smem>>
    %c4 = arith.constant 4 : index
    %5 = memref.load %arg1[%c4] : memref<6xf32, #tpu.memory_space<smem>>
    %c5 = arith.constant 5 : index
    %6 = memref.load %arg1[%c5] : memref<6xf32, #tpu.memory_space<smem>>
    %c0_2 = arith.constant 0 : index
    %7 = memref.load %arg2[%c0_2] : memref<4xf32, #tpu.memory_space<smem>>
    %8 = math.absf %7 : f32
    %c1_3 = arith.constant 1 : index
    %9 = memref.load %arg2[%c1_3] : memref<4xf32, #tpu.memory_space<smem>>
    %10 = math.absf %9 : f32
    %c2_4 = arith.constant 2 : index
    %11 = memref.load %arg2[%c2_4] : memref<4xf32, #tpu.memory_space<smem>>
    %12 = math.absf %11 : f32
    %c3_5 = arith.constant 3 : index
    %13 = memref.load %arg2[%c3_5] : memref<4xf32, #tpu.memory_space<smem>>
    %14 = math.absf %13 : f32
    %15 = vector.broadcast %6 : f32 to vector<16x128xf32>
    %16 = arith.mulf %15, %0 : vector<16x128xf32>
    %17 = vector.broadcast %5 : f32 to vector<16x128xf32>
    %18 = arith.addf %16, %17 : vector<16x128xf32>
    %19 = arith.mulf %18, %0 : vector<16x128xf32>
    %20 = vector.broadcast %4 : f32 to vector<16x128xf32>
    %21 = arith.addf %19, %20 : vector<16x128xf32>
    %22 = arith.mulf %21, %0 : vector<16x128xf32>
    %23 = vector.broadcast %3 : f32 to vector<16x128xf32>
    %24 = arith.addf %22, %23 : vector<16x128xf32>
    %25 = arith.mulf %24, %0 : vector<16x128xf32>
    %26 = vector.broadcast %2 : f32 to vector<16x128xf32>
    %27 = arith.addf %25, %26 : vector<16x128xf32>
    %28 = arith.mulf %27, %0 : vector<16x128xf32>
    %29 = vector.broadcast %1 : f32 to vector<16x128xf32>
    %30 = arith.addf %28, %29 : vector<16x128xf32>
    %31 = math.absf %0 : vector<16x128xf32>
    %32 = vector.broadcast %14 : f32 to vector<16x128xf32>
    %33 = arith.mulf %32, %31 : vector<16x128xf32>
    %34 = vector.broadcast %12 : f32 to vector<16x128xf32>
    %35 = arith.addf %33, %34 : vector<16x128xf32>
    %36 = arith.mulf %35, %31 : vector<16x128xf32>
    %37 = vector.broadcast %10 : f32 to vector<16x128xf32>
    %38 = arith.addf %36, %37 : vector<16x128xf32>
    %39 = arith.mulf %38, %31 : vector<16x128xf32>
    %40 = vector.broadcast %8 : f32 to vector<16x128xf32>
    %41 = arith.addf %39, %40 : vector<16x128xf32>
    %42 = arith.mulf %41, %31 : vector<16x128xf32>
    %cst = arith.constant 1.000000e+00 : f32
    %43 = vector.broadcast %cst : f32 to vector<16x128xf32>
    %44 = arith.addf %42, %43 : vector<16x128xf32>
    %45 = tpu.reciprocal %44 {approx = true} : vector<16x128xf32> -> vector<16x128xf32>
    %46 = arith.mulf %44, %45 : vector<16x128xf32>
    %cst_6 = arith.constant 2.000000e+00 : f32
    %47 = vector.broadcast %cst_6 : f32 to vector<16x128xf32>
    %48 = arith.subf %47, %46 : vector<16x128xf32>
    %49 = arith.mulf %45, %48 : vector<16x128xf32>
    %50 = arith.mulf %30, %49 : vector<16x128xf32>
    %c0_7 = arith.constant 0 : index
    %c0_8 = arith.constant 0 : index
    %51 = vector.load %arg4[%c0_7, %c0_8] : memref<16x128xf32, #tpu.memory_space<vmem>>, vector<16x128xf32>
    tpu.vector_store %arg4[%c0_7, %c0_8], %50 {strides = array<i32>} : memref<16x128xf32, #tpu.memory_space<vmem>>, vector<16x128xf32>,
    return
  }
  func.func @transform_0(%arg0: i32) -> i32 {
    %c0_i32 = arith.constant 0 : i32
    %c0_i32_0 = arith.constant 0 : i32
    return %c0_i32 : i32
  }
  func.func @transform_1(%arg0: i32) -> i32 {
    %c0_i32 = arith.constant 0 : i32
    %c0_i32_0 = arith.constant 0 : i32
    return %c0_i32 : i32
  }
  func.func @transform_2(%arg0: i32) -> (i32, i32) {
    %c0_i32 = arith.constant 0 : i32
    %c0_i32_0 = arith.constant 0 : i32
    return %arg0, %c0_i32 : i32, i32
  }
  func.func @transform_3(%arg0: i32) -> (i32, i32) {
    %c0_i32 = arith.constant 0 : i32
    %c0_i32_0 = arith.constant 0 : i32
    return %arg0, %c0_i32 : i32, i32
  }
}

</mosaic_0001>

<bundles_post_ra>
// kernel: tpu_custom_call.1
= control target key start
LH: loop header
LB: loop body
LE: loop exit
PB: predicated region body
PF: predicated region fallthrough
CT: control target
= control target key end

     0   :  { %8 = vsyncpa [#allocation5], 0  ;;  %s301_s0 = inlined_call_operand.hbm [shape: f32[6], index: 0, kind: input, shape index: {}]   ;;  %s302_s1 = inlined_call_operand.hbm [shape: f32[4], index: 1, kind: input, shape index: {}]   ;;  %s303_s2 = inlined_call_operand.hbm [shape: f32[16,128], index: 2, kind: input, shape index: {}]   ;;  %s304_s3 = inlined_call_operand.hbm [shape: f32[16,128], index: 3, kind: output, shape index: {}]  }
   0x1   :  { %9 = vsyncpa [#allocation7], 0 }
   0x2   :  { %10 = vsyncpa [#allocation3], 0 }
   0x3   :  { %11 = vsyncpa [#allocation4], 0  ;;  %s17_s14 = sshll.u32 %s301_s0, 4  ;;  %s26_s17 = sshll.u32 %s302_s1, 4  ;;  %s18_s14 = int_to_ptr.hbm [resolvable:$true] %s17_s14  ;;  %s27_s17 = int_to_ptr.hbm [resolvable:$true] %s26_s17 }
   0x4   :  { %s251_s18 = smov [#allocation2]   ;;  %s252_s19 = smov [#allocation6]  }
   0x5   :  { %20 = dma.hbm_to_smem %s18_s14, 16, %s251_s18, [#allocation5]  }
   0x6   :  { %29 = dma.hbm_to_smem %s27_s17, 16, %s252_s19, [#allocation7]  }
   0x7   :  { %s34_s22 = sshll.u32 %s303_s2, 4  ;;  %s253_s23 = smov [#allocation8]   ;;  %s35_s22 = int_to_ptr.hbm [resolvable:$true] %s34_s22 }
   0x8   :  { %s36_s24 = sshll.u32 %s253_s23, 4  ;;  %s254_s25 = smov 128   ;;  %s37_s24 = int_to_ptr.vmem [resolvable:$true] %s36_s24 }
   0x9   :  { %s255_s0 = smov 8  }
   0xa   :  { %42 = dma.hbm_to_vmem [thread:$0]  %s35_s22, 256, %s37_s24, [#allocation3], %s254_s25, %s254_s25, %s255_s0  }
   0xb   :  { %243 = dma.done.wait [#allocation5], 16  }
   0xc   :  { %244 = vsyncadd [#allocation5], 4294967280 }
   0xd   :  { %245 = dma.done.wait [#allocation7], 16  }
   0xe   :  { %246 = vsyncadd [#allocation7], 4294967280 }
   0xf   :  { %247 = dma.done.wait [#allocation3], 256  }
  0x10   :  { %248 = vsyncadd [#allocation3], 4294967040 }
  0x11   :  { %55 = sfence }
  0x12   :  { %s156_s1 = sld [smem:[#allocation2 + $0x4]]  ;;  %v56_v0 = vld [vmem:[#allocation8] sm:$0xff]  ;;  %v57_v1 = vld [vmem:[#allocation8 + $0x8] sm:$0xff]  ;;  %s256_s11 = smov [#allocation9]  }
  0x13   :  { %s157_s26 = sld [smem:[#allocation2 + $0x5]]  ;;  %v98_v6 = vand.u32 2147483647, %v56_v0  ;;  %v99_v7 = vand.u32 2147483647, %v57_v1  ;;  %s136_s12 = sshll.u32 %s256_s11, 4  ;;  %s137_s12 = int_to_ptr.vmem [resolvable:$true] %s136_s12 }
  0x14   :  { %s155_s2 = sld [smem:[#allocation2 + $0x3]]  ;;  %s138_s15 = sshll.u32 %s304_s3, 4  ;;  %s139_s15 = int_to_ptr.hbm [resolvable:$true] %s138_s15 }
  0x15   :  { %s289_s27 = sld [smem:[#allocation6 + $0x1]] }
  0x16   :  { %s159_s28 = sld [smem:[#allocation6 + $0x2]] }
  0x17   :  { %s160_s29 = sld [smem:[#allocation6 + $0x3]] }
  0x18   :  { %v75_v3 = vstv %s156_s1  ;;  %s291_s30 = sld [smem:[#allocation6]] }
  0x19   :  { %v72_v2 = vstv %s157_s26  ;;  %s154_s5 = sld [smem:[#allocation2 + $0x2]] }
  0x1a   :  { %v73_v4 = vmul.f32 %v72_v2, %v56_v0  ;;  %v74_v5 = vmul.f32 %v72_v2, %v57_v1  ;;  %v80_v10 = vstv %s155_s2  ;;  %s153_s9 = sld [smem:[#allocation2 + $0x1]] }
  0x1b   :  { %s67_s7 = sand.u32 2147483647, %s289_s27  ;;  %s58_s10 = sld [smem:[#allocation2]] }
  0x1c   :  { %s69_s4 = sand.u32 2147483647, %s159_s28  ;;  %v76_v8 = vadd.f32 %v75_v3, %v73_v4  ;;  %v77_v9 = vadd.f32 %v75_v3, %v74_v5  ;;  %v108_v21 = vstv %s67_s7 }
  0x1d   :  { %s71_s6 = sand.u32 2147483647, %s160_s29  ;;  %v103_v13 = vstv %s69_s4 }
  0x1e   :  { %v78_v11 = vmul.f32 %v76_v8, %v56_v0  ;;  %v100_v12 = vstv %s71_s6  ;;  %v79_v14 = vmul.f32 %v77_v9, %v57_v1  ;;  %s65_s8 = sand.u32 2147483647, %s291_s30 }
  0x1f   :  { %v101_v15 = vmul.f32 %v100_v12, %v98_v6  ;;  %v102_v16 = vmul.f32 %v100_v12, %v99_v7  ;;  %v85_v25 = vstv %s154_s5  ;;  %v113_v29 = vstv %s65_s8 }
  0x20   :  { %v81_v17 = vadd.f32 %v80_v10, %v78_v11  ;;  %v82_v19 = vadd.f32 %v80_v10, %v79_v14  ;;  %v90_v39 = vstv %s153_s9 }
  0x21   :  { %v104_v18 = vadd.f32 %v103_v13, %v101_v15  ;;  %v105_v20 = vadd.f32 %v103_v13, %v102_v16  ;;  %v95_v47 = vstv %s58_s10 }
  0x22   :  { %v83_v24 = vmul.f32 %v81_v17, %v56_v0  ;;  %v84_v27 = vmul.f32 %v82_v19, %v57_v1 }
  0x23   :  { %v106_v22 = vmul.f32 %v104_v18, %v98_v6  ;;  %v107_v23 = vmul.f32 %v105_v20, %v99_v7 }
  0x24   :  { %v86_v32 = vadd.f32 %v85_v25, %v83_v24  ;;  %v87_v34 = vadd.f32 %v85_v25, %v84_v27 }
  0x25   :  { %v109_v26 = vadd.f32 %v108_v21, %v106_v22  ;;  %v110_v28 = vadd.f32 %v108_v21, %v107_v23 }
  0x26   :  { %v88_v38 = vmul.f32 %v86_v32, %v56_v0  ;;  %v89_v41 = vmul.f32 %v87_v34, %v57_v1 }
  0x27   :  { %v111_v30 = vmul.f32 %v109_v26, %v98_v6  ;;  %v112_v31 = vmul.f32 %v110_v28, %v99_v7 }
  0x28   :  { %v91_v43 = vadd.f32 %v90_v39, %v88_v38  ;;  %v92_v44 = vadd.f32 %v90_v39, %v89_v41 }
  0x29   :  { %v114_v33 = vadd.f32 %v113_v29, %v111_v30  ;;  %v115_v35 = vadd.f32 %v113_v29, %v112_v31 }
  0x2a   :  { %v93_v45 = vmul.f32 %v91_v43, %v56_v0  ;;  %v94_v48 = vmul.f32 %v92_v44, %v57_v1 }
  0x2b   :  { %v116_v36 = vmul.f32 %v114_v33, %v98_v6  ;;  %v117_v37 = vmul.f32 %v115_v35, %v99_v7 }
  0x2c   :  { %v96_v52 = vadd.f32 %v95_v47, %v93_v45  ;;  %v97_v54 = vadd.f32 %v95_v47, %v94_v48 }
  0x2d   :  { %v118_v40 = vadd.f32 1.0, %v116_v36  ;;  %v119_v42 = vadd.f32 1.0, %v117_v37 }
  0x2f   :  { %167 = vrcp.f32 %v118_v40 }
  0x30   :  { %169 = vrcp.f32 %v119_v42 }
  0x35   :  { %v168_v46 = vpop.eup %167 }
  0x36   :  { %v170_v49 = vpop.eup %169  ;;  %v122_v50 = vmul.f32 %v168_v46, %v118_v40 }
  0x37   :  { %v123_v51 = vmul.f32 %v170_v49, %v119_v42 }
  0x38   :  { %v124_v53 = vsub.f32 2.0, %v122_v50 }
  0x39   :  { %v125_v55 = vsub.f32 2.0, %v123_v51 }
  0x3a   :  { %v126_v56 = vmul.f32 %v168_v46, %v124_v53 }
  0x3b   :  { %v127_v57 = vmul.f32 %v170_v49, %v125_v55 }
  0x3c   :  { %v128_v58 = vmul.f32 %v126_v56, %v96_v52 }
  0x3d   :  { %v129_v59 = vmul.f32 %v127_v57, %v97_v54 }
  0x3e   :  { %130 = vst [vmem:[#allocation9] sm:$0xff] %v128_v58 }
  0x3f   :  { %131 = vst [vmem:[#allocation9 + $0x8] sm:$0xff] %v129_v59 }
  0x40   :  { %144 = dma.vmem_to_hbm [thread:$0]  %s137_s12, 256, %s139_s15, [#allocation4], %s254_s25, %s254_s25, %s255_s0  }
  0x41   :  { %249 = dma.done.wait [#allocation4], 256  }
  0x42   :  { %250 = vsyncadd [#allocation4], 4294967040 }
  0x43   :  { %149 = vsyncpa [#allocation3], 1 }
  0x44   :  { %150 = vsyncpa [#allocation4], 1 }
  0x45   :  { %151 = vsyncpa [#allocation5], 1 }
  0x46   :  { %152 = vsyncpa [#allocation7], 1 }

</bundles_post_ra>
